<compile_context>
chip_gen: v7x
topology: tpu7x:2x2x1
jax: 0.10.0
libtpu: 0.0.40
codegen_flags: <defaults>
</compile_context>

<pallas_src>
import jax
import jax.numpy as jnp
from jax.experimental import pallas as pl
from jax.experimental.pallas import tpu as pltpu

OBS_DIM = 24
N_DISCRETE = 8
TOTAL_DIM = OBS_DIM + N_DISCRETE   # input feature dim (32)
HIDDEN_DIM = 32                    # hidden_dim (small for the example)
BATCH = 8

N_LAYERS = 7                       # 6 hidden Linear+ReLU, 1 Linear head
TILE_B = 256                       # batch tile (lane dim); 256-multiple for v6e/v7x MXU


def _round_up(x, m):
    return ((x + m - 1) // m) * m


# Common padded feature dim for the packed parameter arrays.
D_PAD = _round_up(max(TOTAL_DIM, HIDDEN_DIM, 8), 8)


def ev_kernel(x_ref, w_ref, b_ref, out_ref):
    """Fused 7-layer MLP, transposed layout (features x batch).

    x_ref  : (D_PAD, TILE_B) f32   -- x^T tile, batch in lanes
    w_ref  : (7, D_PAD, D_PAD) bf16 -- layers 0..5 stored as W_i^T, layer 6 as W_7
    b_ref  : (7, D_PAD, 1) f32
    out_ref: (1, TILE_B) f32        -- lane-dense output tile
    """
    h = x_ref[...]                                   # (D_PAD, TILE_B) f32

    # 6 hidden layers on the MXU: h <- relu(W_i^T @ h + b_i), f32 accumulation.
    for i in range(N_LAYERS - 1):
        w = w_ref[i, :, :]                           # (D_PAD, D_PAD) bf16
        b = b_ref[i, :, :]                           # (D_PAD, 1) f32
        h = jnp.dot(w, h.astype(jnp.bfloat16),
                    preferred_element_type=jnp.float32) + b
        h = jnp.maximum(h, 0.0)

    # 32 -> 1 head on VPU/XLU (broadcast multiply + sublane reduce) to avoid a
    # 1-wide serial MXU pass on the critical path.
    w7 = w_ref[N_LAYERS - 1, :, :][:, 0:1].astype(jnp.float32)   # (D_PAD, 1)
    b7 = b_ref[N_LAYERS - 1, 0:1, :]                             # (1, 1)
    logits = jnp.sum(h * w7, axis=0, keepdims=True) + b7         # (1, TILE_B)
    out_ref[...] = jnp.tanh(logits)


def ev_network(x, w_packed, b_packed):
    """x: (B, TOTAL_DIM) f32 -> (B, 1) f32."""
    B = x.shape[0]
    d_pad = w_packed.shape[1]
    b_pad = _round_up(B, TILE_B)

    # Transpose to (features, batch) and zero-pad both dims.
    xt = jnp.zeros((d_pad, b_pad), jnp.float32)
    xt = xt.at[: x.shape[1], :B].set(x.T)

    out_t = pl.pallas_call(
        ev_kernel,
        out_shape=jax.ShapeDtypeStruct((1, b_pad), jnp.float32),
        grid_spec=pltpu.PrefetchScalarGridSpec(
            num_scalar_prefetch=0,
            grid=(b_pad // TILE_B,),
            in_specs=[
                pl.BlockSpec((d_pad, TILE_B), lambda i: (0, i)),          # x^T tile
                pl.BlockSpec((N_LAYERS, d_pad, d_pad), lambda i: (0, 0, 0)),  # packed W (resident)
                pl.BlockSpec((N_LAYERS, d_pad, 1), lambda i: (0, 0, 0)),      # packed b (resident)
            ],
            out_specs=pl.BlockSpec((1, TILE_B), lambda i: (0, i)),
        ),
        compiler_params=pltpu.CompilerParams(
            dimension_semantics=("parallel",)),   # shards batch tiles across v7x's 2 TCs
    )(xt, w_packed, b_packed)

    return out_t[:, :B].T                          # (B, 1)


def init_params(key, total_dim, hidden_dim):
    """Deterministic init matching the nn.Sequential layer shapes (f32)."""
    dims = [total_dim] + [hidden_dim] * 6 + [1]
    params = []
    for i in range(len(dims) - 1):
        fan_in, fan_out = dims[i], dims[i + 1]
        key, kw, kb = jax.random.split(key, 3)
        bound = 1.0 / jnp.sqrt(jnp.float32(fan_in))
        w = jax.random.uniform(kw, (fan_in, fan_out), jnp.float32, -bound, bound)
        b = jax.random.uniform(kb, (1, fan_out), jnp.float32, -bound, bound)
        params.append((w, b))
    return params


def pack_params(params, d_pad):
    """Pack per-layer (W, b) into one bf16 weight block + one f32 bias block.

    Layers 0..5 are stored transposed (out, in) so the kernel computes
    h = W^T @ h directly; the head (layer 6) is stored un-transposed so its
    single output column can be sliced for the VPU/XLU head.
    Zero padding keeps the padded features exactly zero through every layer.
    """
    n = len(params)
    w_packed = jnp.zeros((n, d_pad, d_pad), jnp.bfloat16)
    b_packed = jnp.zeros((n, d_pad, 1), jnp.float32)
    for i, (w, b) in enumerate(params):
        fan_in, fan_out = w.shape
        if i < n - 1:
            w_packed = w_packed.at[i, :fan_out, :fan_in].set(
                w.T.astype(jnp.bfloat16))
        else:
            w_packed = w_packed.at[i, :fan_in, :fan_out].set(
                w.astype(jnp.bfloat16))
        b_packed = b_packed.at[i, :fan_out, 0].set(b.reshape(-1))
    return w_packed, b_packed


def ev_network_ref(x, params):
    """Pure-JAX f32 reference for correctness check."""
    h = x
    n = len(params)
    for i, (w, b) in enumerate(params):
        h = h @ w + b
        if i < n - 1:
            h = jnp.maximum(h, 0.0)
    return jnp.tanh(h)


if __name__ == "__main__":
    key = jax.random.PRNGKey(0)
    key, kx = jax.random.split(key)
    obs = jax.random.normal(kx, (BATCH, TOTAL_DIM), jnp.float32)
    params = init_params(key, TOTAL_DIM, HIDDEN_DIM)
    w_packed, b_packed = pack_params(params, D_PAD)

    out = ev_network(obs, w_packed, b_packed)
    out = jax.block_until_ready(out)

    ref = ev_network_ref(obs, params)
    assert out.shape == (BATCH, 1)
    # bf16 weights in the matmuls -> loosened tolerance vs. the f32 reference.
    assert jnp.allclose(out, ref, atol=2e-2, rtol=2e-2), (
        float(jnp.max(jnp.abs(out - ref))))

    print("KERNEL_OK")
</pallas_src>

<mosaic_0001>
module attributes {stable_mosaic.version = 11 : i64} {
  func.func @ev_kernel(%arg0: i32, %arg1: memref<32x256xf32, #tpu.memory_space<vmem>>, %arg2: memref<7x32x32xbf16, #tpu.memory_space<vmem>>, %arg3: memref<7x32x1xf32, #tpu.memory_space<vmem>>, %arg4: memref<1x256xf32, #tpu.memory_space<vmem>>) attributes {dimension_semantics = [#tpu.dimension_semantics<parallel>], iteration_bounds = array<i64: 1>, scalar_prefetch = 0 : i64, scratch_operands = 0 : i64, tpu.core_type = #tpu.core_type<tc>, window_params = [{transform_indices = @transform_0, window_bounds = array<i64: 32, 256>}, {pipeline_mode = #tpu.pipeline_mode<synchronous>, transform_indices = @transform_1, window_bounds = array<i64: 7, 32, 32>}, {pipeline_mode = #tpu.pipeline_mode<synchronous>, transform_indices = @transform_2, window_bounds = array<i64: 7, 32, 1>}, {transform_indices = @transform_3, window_bounds = array<i64: 1, 256>}]} {
    %c0 = arith.constant 0 : index
    %c0_0 = arith.constant 0 : index
    %0 = vector.load %arg1[%c0, %c0_0] : memref<32x256xf32, #tpu.memory_space<vmem>>, vector<32x256xf32>
    %c0_1 = arith.constant 0 : index
    %c0_2 = arith.constant 0 : index
    %c0_3 = arith.constant 0 : index
    %1 = vector.load %arg2[%c0_1, %c0_2, %c0_3] : memref<7x32x32xbf16, #tpu.memory_space<vmem>>, vector<1x32x32xbf16>
    %2 = vector.shape_cast %1 : vector<1x32x32xbf16> to vector<32x32xbf16>
    %c0_4 = arith.constant 0 : index
    %c0_5 = arith.constant 0 : index
    %c0_6 = arith.constant 0 : index
    %3 = vector.load %arg3[%c0_4, %c0_5, %c0_6] : memref<7x32x1xf32, #tpu.memory_space<vmem>>, vector<1x32x1xf32>
    %4 = vector.shape_cast %3 : vector<1x32x1xf32> to vector<32x1xf32>
    %5 = arith.truncf %0 : vector<32x256xf32> to vector<32x256xbf16>
    %cst = arith.constant dense<0.000000e+00> : vector<32x256xf32>
    %6 = tpu.matmul %2, %5, %cst {dimension_numbers = #tpu.dot_dimension_numbers<[1], [0], [0], [1], [0, 0, 1, 1], [], []>} : vector<32x32xbf16>, vector<32x256xbf16>, vector<32x256xf32> -> vector<32x256xf32>
    %7 = vector.broadcast %4 : vector<32x1xf32> to vector<32x256xf32>
    %8 = arith.addf %6, %7 : vector<32x256xf32>
    %cst_7 = arith.constant 0.000000e+00 : f32
    %9 = vector.broadcast %cst_7 : f32 to vector<32x256xf32>
    %10 = arith.maximumf %8, %9 : vector<32x256xf32>
    %c1 = arith.constant 1 : index
    %c0_8 = arith.constant 0 : index
    %c0_9 = arith.constant 0 : index
    %11 = vector.load %arg2[%c1, %c0_8, %c0_9] : memref<7x32x32xbf16, #tpu.memory_space<vmem>>, vector<1x32x32xbf16>
    %12 = vector.shape_cast %11 : vector<1x32x32xbf16> to vector<32x32xbf16>
    %c1_10 = arith.constant 1 : index
    %c0_11 = arith.constant 0 : index
    %c0_12 = arith.constant 0 : index
    %13 = vector.load %arg3[%c1_10, %c0_11, %c0_12] : memref<7x32x1xf32, #tpu.memory_space<vmem>>, vector<1x32x1xf32>
    %14 = vector.shape_cast %13 : vector<1x32x1xf32> to vector<32x1xf32>
    %15 = arith.truncf %10 : vector<32x256xf32> to vector<32x256xbf16>
    %cst_13 = arith.constant dense<0.000000e+00> : vector<32x256xf32>
    %16 = tpu.matmul %12, %15, %cst_13 {dimension_numbers = #tpu.dot_dimension_numbers<[1], [0], [0], [1], [0, 0, 1, 1], [], []>} : vector<32x32xbf16>, vector<32x256xbf16>, vector<32x256xf32> -> vector<32x256xf32>
    %17 = vector.broadcast %14 : vector<32x1xf32> to vector<32x256xf32>
    %18 = arith.addf %16, %17 : vector<32x256xf32>
    %cst_14 = arith.constant 0.000000e+00 : f32
    %19 = vector.broadcast %cst_14 : f32 to vector<32x256xf32>
    %20 = arith.maximumf %18, %19 : vector<32x256xf32>
    %c2 = arith.constant 2 : index
    %c0_15 = arith.constant 0 : index
    %c0_16 = arith.constant 0 : index
    %21 = vector.load %arg2[%c2, %c0_15, %c0_16] : memref<7x32x32xbf16, #tpu.memory_space<vmem>>, vector<1x32x32xbf16>
    %22 = vector.shape_cast %21 : vector<1x32x32xbf16> to vector<32x32xbf16>
    %c2_17 = arith.constant 2 : index
    %c0_18 = arith.constant 0 : index
    %c0_19 = arith.constant 0 : index
    %23 = vector.load %arg3[%c2_17, %c0_18, %c0_19] : memref<7x32x1xf32, #tpu.memory_space<vmem>>, vector<1x32x1xf32>
    %24 = vector.shape_cast %23 : vector<1x32x1xf32> to vector<32x1xf32>
    %25 = arith.truncf %20 : vector<32x256xf32> to vector<32x256xbf16>
    %cst_20 = arith.constant dense<0.000000e+00> : vector<32x256xf32>
    %26 = tpu.matmul %22, %25, %cst_20 {dimension_numbers = #tpu.dot_dimension_numbers<[1], [0], [0], [1], [0, 0, 1, 1], [], []>} : vector<32x32xbf16>, vector<32x256xbf16>, vector<32x256xf32> -> vector<32x256xf32>
    %27 = vector.broadcast %24 : vector<32x1xf32> to vector<32x256xf32>
    %28 = arith.addf %26, %27 : vector<32x256xf32>
    %cst_21 = arith.constant 0.000000e+00 : f32
    %29 = vector.broadcast %cst_21 : f32 to vector<32x256xf32>
    %30 = arith.maximumf %28, %29 : vector<32x256xf32>
    %c3 = arith.constant 3 : index
    %c0_22 = arith.constant 0 : index
    %c0_23 = arith.constant 0 : index
    %31 = vector.load %arg2[%c3, %c0_22, %c0_23] : memref<7x32x32xbf16, #tpu.memory_space<vmem>>, vector<1x32x32xbf16>
    %32 = vector.shape_cast %31 : vector<1x32x32xbf16> to vector<32x32xbf16>
    %c3_24 = arith.constant 3 : index
    %c0_25 = arith.constant 0 : index
    %c0_26 = arith.constant 0 : index
    %33 = vector.load %arg3[%c3_24, %c0_25, %c0_26] : memref<7x32x1xf32, #tpu.memory_space<vmem>>, vector<1x32x1xf32>
    %34 = vector.shape_cast %33 : vector<1x32x1xf32> to vector<32x1xf32>
    %35 = arith.truncf %30 : vector<32x256xf32> to vector<32x256xbf16>
    %cst_27 = arith.constant dense<0.000000e+00> : vector<32x256xf32>
    %36 = tpu.matmul %32, %35, %cst_27 {dimension_numbers = #tpu.dot_dimension_numbers<[1], [0], [0], [1], [0, 0, 1, 1], [], []>} : vector<32x32xbf16>, vector<32x256xbf16>, vector<32x256xf32> -> vector<32x256xf32>
    %37 = vector.broadcast %34 : vector<32x1xf32> to vector<32x256xf32>
    %38 = arith.addf %36, %37 : vector<32x256xf32>
    %cst_28 = arith.constant 0.000000e+00 : f32
    %39 = vector.broadcast %cst_28 : f32 to vector<32x256xf32>
    %40 = arith.maximumf %38, %39 : vector<32x256xf32>
    %c4 = arith.constant 4 : index
    %c0_29 = arith.constant 0 : index
    %c0_30 = arith.constant 0 : index
    %41 = vector.load %arg2[%c4, %c0_29, %c0_30] : memref<7x32x32xbf16, #tpu.memory_space<vmem>>, vector<1x32x32xbf16>
    %42 = vector.shape_cast %41 : vector<1x32x32xbf16> to vector<32x32xbf16>
    %c4_31 = arith.constant 4 : index
    %c0_32 = arith.constant 0 : index
    %c0_33 = arith.constant 0 : index
    %43 = vector.load %arg3[%c4_31, %c0_32, %c0_33] : memref<7x32x1xf32, #tpu.memory_space<vmem>>, vector<1x32x1xf32>
    %44 = vector.shape_cast %43 : vector<1x32x1xf32> to vector<32x1xf32>
    %45 = arith.truncf %40 : vector<32x256xf32> to vector<32x256xbf16>
    %cst_34 = arith.constant dense<0.000000e+00> : vector<32x256xf32>
    %46 = tpu.matmul %42, %45, %cst_34 {dimension_numbers = #tpu.dot_dimension_numbers<[1], [0], [0], [1], [0, 0, 1, 1], [], []>} : vector<32x32xbf16>, vector<32x256xbf16>, vector<32x256xf32> -> vector<32x256xf32>
    %47 = vector.broadcast %44 : vector<32x1xf32> to vector<32x256xf32>
    %48 = arith.addf %46, %47 : vector<32x256xf32>
    %cst_35 = arith.constant 0.000000e+00 : f32
    %49 = vector.broadcast %cst_35 : f32 to vector<32x256xf32>
    %50 = arith.maximumf %48, %49 : vector<32x256xf32>
    %c5 = arith.constant 5 : index
    %c0_36 = arith.constant 0 : index
    %c0_37 = arith.constant 0 : index
    %51 = vector.load %arg2[%c5, %c0_36, %c0_37] : memref<7x32x32xbf16, #tpu.memory_space<vmem>>, vector<1x32x32xbf16>
    %52 = vector.shape_cast %51 : vector<1x32x32xbf16> to vector<32x32xbf16>
    %c5_38 = arith.constant 5 : index
    %c0_39 = arith.constant 0 : index
    %c0_40 = arith.constant 0 : index
    %53 = vector.load %arg3[%c5_38, %c0_39, %c0_40] : memref<7x32x1xf32, #tpu.memory_space<vmem>>, vector<1x32x1xf32>
    %54 = vector.shape_cast %53 : vector<1x32x1xf32> to vector<32x1xf32>
    %55 = arith.truncf %50 : vector<32x256xf32> to vector<32x256xbf16>
    %cst_41 = arith.constant dense<0.000000e+00> : vector<32x256xf32>
    %56 = tpu.matmul %52, %55, %cst_41 {dimension_numbers = #tpu.dot_dimension_numbers<[1], [0], [0], [1], [0, 0, 1, 1], [], []>} : vector<32x32xbf16>, vector<32x256xbf16>, vector<32x256xf32> -> vector<32x256xf32>
    %57 = vector.broadcast %54 : vector<32x1xf32> to vector<32x256xf32>
    %58 = arith.addf %56, %57 : vector<32x256xf32>
    %cst_42 = arith.constant 0.000000e+00 : f32
    %59 = vector.broadcast %cst_42 : f32 to vector<32x256xf32>
    %60 = arith.maximumf %58, %59 : vector<32x256xf32>
    %c6 = arith.constant 6 : index
    %c0_43 = arith.constant 0 : index
    %c0_44 = arith.constant 0 : index
    %61 = vector.load %arg2[%c6, %c0_43, %c0_44] : memref<7x32x32xbf16, #tpu.memory_space<vmem>>, vector<1x32x32xbf16>
    %62 = vector.shape_cast %61 : vector<1x32x32xbf16> to vector<32x32xbf16>
    %63 = vector.extract_strided_slice %62 {offsets = [0, 0], sizes = [32, 1], strides = [1, 1]} : vector<32x32xbf16> to vector<32x1xbf16>
    %64 = arith.extf %63 : vector<32x1xbf16> to vector<32x1xf32>
    %c6_45 = arith.constant 6 : index
    %c0_46 = arith.constant 0 : index
    %c0_47 = arith.constant 0 : index
    %65 = vector.load %arg3[%c6_45, %c0_46, %c0_47] : memref<7x32x1xf32, #tpu.memory_space<vmem>>, vector<1x1x1xf32>
    %66 = vector.shape_cast %65 : vector<1x1x1xf32> to vector<1x1xf32>
    %67 = vector.broadcast %64 : vector<32x1xf32> to vector<32x256xf32>
    %68 = arith.mulf %60, %67 : vector<32x256xf32>
    %cst_48 = arith.constant dense<0.000000e+00> : vector<256xf32>
    %69 = vector.multi_reduction <add>, %68, %cst_48 [0] : vector<32x256xf32> to vector<256xf32>
    %70 = vector.shape_cast %69 : vector<256xf32> to vector<1x256xf32>
    %71 = vector.broadcast %66 : vector<1x1xf32> to vector<1x256xf32>
    %72 = arith.addf %70, %71 : vector<1x256xf32>
    %73 = math.tanh %72 : vector<1x256xf32>
    %c0_49 = arith.constant 0 : index
    %c0_50 = arith.constant 0 : index
    %74 = vector.load %arg4[%c0_49, %c0_50] : memref<1x256xf32, #tpu.memory_space<vmem>>, vector<1x256xf32>
    tpu.vector_store %arg4[%c0_49, %c0_50], %73 {strides = array<i32>} : memref<1x256xf32, #tpu.memory_space<vmem>>, vector<1x256xf32>,
    return
  }
  func.func @transform_0(%arg0: i32) -> (i32, i32) {
    %c0_i32 = arith.constant 0 : i32
    %c0_i32_0 = arith.constant 0 : i32
    return %c0_i32, %arg0 : i32, i32
  }
  func.func @transform_1(%arg0: i32) -> (i32, i32, i32) {
    %c0_i32 = arith.constant 0 : i32
    %c0_i32_0 = arith.constant 0 : i32
    %c0_i32_1 = arith.constant 0 : i32
    %c0_i32_2 = arith.constant 0 : i32
    return %c0_i32, %c0_i32_0, %c0_i32_1 : i32, i32, i32
  }
  func.func @transform_2(%arg0: i32) -> (i32, i32, i32) {
    %c0_i32 = arith.constant 0 : i32
    %c0_i32_0 = arith.constant 0 : i32
    %c0_i32_1 = arith.constant 0 : i32
    %c0_i32_2 = arith.constant 0 : i32
    return %c0_i32, %c0_i32_0, %c0_i32_1 : i32, i32, i32
  }
  func.func @transform_3(%arg0: i32) -> (i32, i32) {
    %c0_i32 = arith.constant 0 : i32
    %c0_i32_0 = arith.constant 0 : i32
    return %c0_i32, %arg0 : i32, i32
  }
}

</mosaic_0001>

<bundles_post_ra>
// kernel: tpu_custom_call.1
= control target key start
LH: loop header
LB: loop body
LE: loop exit
PB: predicated region body
PF: predicated region fallthrough
CT: control target
= control target key end

     0   :  { %v921_v7 = vmov 0   ;;  %vm66_vm0 = vcmask 261120   ;;  %s1123_s0 = inlined_call_operand.vmem [shape: f32[32,256], index: 0, kind: input, shape index: {}]   ;;  %s1124_s1 = inlined_call_operand.vmem [shape: bf16[7,32,32], index: 1, kind: input, shape index: {}]   ;;  %s1125_s2 = inlined_call_operand.vmem [shape: f32[7,32,1], index: 2, kind: input, shape index: {}]   ;;  %s1126_s3 = inlined_call_operand.hbm [shape: f32[1,256], index: 3, kind: output, shape index: {}]  }
   0x1   :  { %v17_v0 = vld [vmem:[%s1123_s0 + $0x8] sm:$0xff]  ;;  %v19_v1 = vld [vmem:[%s1123_s0 + $0x18] sm:$0xff]  ;;  %v16_v2 = vld [vmem:[%s1123_s0] sm:$0xff]  ;;  %105 = vmatprep.mubr.bf16.mxu0 %v921_v7  ;;  %874 = vset.pattern.permute.xlu0 %v921_v7 }
   0x2   :  { %v33_v3 = vpack.c.bf16 %v19_v1, %v17_v0  ;;  %v18_v4 = vld [vmem:[%s1123_s0 + $0x10] sm:$0xff]  ;;  %v21_v5 = vld [vmem:[%s1123_s0 + $0x28] sm:$0xff]  ;;  %v23_v6 = vld [vmem:[%s1123_s0 + $0x38] sm:$0xff]  ;;  %875 = vset.pattern.permute.xlu1 %v921_v7  ;;  %216 = vmatprep.mubr.bf16.mxu1 %v921_v7 }
   0x3   :  { %v32_v8 = vpack.c.bf16 %v18_v4, %v16_v2  ;;  %v35_v9 = vpack.c.bf16 %v23_v6, %v21_v5  ;;  %v20_v10 = vld [vmem:[%s1123_s0 + $0x20] sm:$0xff]  ;;  %v22_v11 = vld [vmem:[%s1123_s0 + $0x30] sm:$0xff]  ;;  %v29_v15 = vld [vmem:[%s1125_s2 + $0x8] sm:$0xff] }
   0x4   :  { %73 = vmatprep.subr.bf16.mxu0 %v33_v3  ;;  %v34_v12 = vpack.c.bf16 %v22_v11, %v20_v10  ;;  %v28_v13 = vld [vmem:[%s1125_s2] sm:$0xff]  ;;  %v30_v14 = vld [vmem:[%s1125_s2 + $0x10] sm:$0xff]  ;;  %v31_v17 = vld [vmem:[%s1125_s2 + $0x18] sm:$0xff] }
   0x5   :  { %74 = vmatpush1.bf16.msra.mxu0 %v32_v8  ;;  %38 = vperm.xlu0 %874, %v28_v13   ;;  %v881_v16 = vld [vmem:[%s1124_s1] sm:$0xff]   ;;  %v801_v19 = vld [vmem:[%s1125_s2 + $0x28] sm:$0xff]  ;;  %v802_v21 = vld [vmem:[%s1125_s2 + $0x30] sm:$0xff] }
   0x6   :  { %75 = vmatprep.subr.bf16.mxu0 %v35_v9  ;;  %48 = vperm.xlu1 %875, %v30_v14   ;;  %v800_v18 = vld [vmem:[%s1125_s2 + $0x20] sm:$0xff]  ;;  %v882_v20 = vld [vmem:[%s1124_s1 + $0x8] sm:$0xff]   ;;  %v803_v22 = vld [vmem:[%s1125_s2 + $0x38] sm:$0xff] }
   0x7   :  { %v812_v23 = vld [vmem:[%s1125_s2 + $0x40] sm:$0xff]  ;;  %v813_v24 = vld [vmem:[%s1125_s2 + $0x48] sm:$0xff] }
   0x9   :  { %76 = vmatpush1.bf16.msra.mxu0 %v34_v12  ;;  %43 = vperm.xlu0 %874, %v29_v15  }
   0xa   :  { %53 = vperm.xlu1 %875, %v31_v17  }
   0xc   :  { %794 = vmatmul.mubr.msk.bf16.vlgmr.msra.gmra.mrb[0].mxu0 %vm66_vm0, %v881_v16 }
   0xd   :  { %115 = vmatprep.mubr.bf16.mxu0 %v921_v7  ;;  %150 = vperm.xlu0 %874, %v800_v18  }
   0xe   :  { %155 = vperm.xlu1 %875, %v801_v19  }
  0x11   :  { %160 = vperm.xlu0 %874, %v802_v21  }
  0x12   :  { %165 = vperm.xlu1 %875, %v803_v22  }
  0x14   :  { %795 = vmatmul.mubr.msk.bf16.gmra.mrb[4].mxu0 %vm66_vm0, %v882_v20 }
  0x15   :  { %327 = vmatprep.mubr.bf16.mxu0 %v921_v7 }
  0x16   :  { %8 = vsyncpa [#allocation3], 0  ;;  %261 = vperm.xlu0 %874, %v812_v23   ;;  %266 = vperm.xlu1 %875, %v813_v24   ;;  %v814_v25 = vld [vmem:[%s1125_s2 + $0x50] sm:$0xff]  ;;  %v815_v26 = vld [vmem:[%s1125_s2 + $0x58] sm:$0xff] }
  0x17   :  { %v824_v27 = vld [vmem:[%s1125_s2 + $0x60] sm:$0xff]  ;;  %v825_v28 = vld [vmem:[%s1125_s2 + $0x68] sm:$0xff]  ;;  %v826_v29 = vld [vmem:[%s1125_s2 + $0x70] sm:$0xff] }
  0x18   :  { %v827_v30 = vld [vmem:[%s1125_s2 + $0x78] sm:$0xff]  ;;  %v836_v31 = vld [vmem:[%s1125_s2 + $0x80] sm:$0xff]  ;;  %v837_v32 = vld [vmem:[%s1125_s2 + $0x88] sm:$0xff] }
  0x19   :  { %v838_v33 = vld [vmem:[%s1125_s2 + $0x90] sm:$0xff]  ;;  %v839_v34 = vld [vmem:[%s1125_s2 + $0x98] sm:$0xff]  ;;  %v848_v35 = vld [vmem:[%s1125_s2 + $0xa0] sm:$0xff] }
  0x1a   :  { %271 = vperm.xlu0 %874, %v814_v25   ;;  %276 = vperm.xlu1 %875, %v815_v26   ;;  %v869_v36 = vld [vmem:[%s1124_s1 + $0x60] sm:$0xff]   ;;  %v849_v37 = vld [vmem:[%s1125_s2 + $0xa8] sm:$0xff]  ;;  %v850_v40 = vld [vmem:[%s1125_s2 + $0xb0] sm:$0xff] }
  0x1b   :  { %v863_v38 = vunpack.c.l.bf16 %v869_v36  ;;  %v864_v39 = vunpack.c.h.bf16 %v869_v36  ;;  %v851_v41 = vld [vmem:[%s1125_s2 + $0xb8] sm:$0xff]  ;;  %v870_v42 = vld [vmem:[%s1124_s1 + $0x68] sm:$0xff]   ;;  %v860_v46 = vld [vmem:[%s1125_s2 + $0xc0] sm:$0x1] }
  0x1c   :  { %v867_v44 = vunpack.c.l.bf16 %v870_v42  ;;  %v868_v45 = vunpack.c.h.bf16 %v870_v42  ;;  %v883_v16 = vld [vmem:[%s1124_s1 + $0x10] sm:$0xff]   ;;  %v884_v17 = vld [vmem:[%s1124_s1 + $0x18] sm:$0xff]  }
  0x1d   :  { %v876_v43 = vpack.i.bf16 %v864_v39, %v863_v38 }
  0x1e   :  { %372 = vperm.xlu0 %874, %v824_v27   ;;  %377 = vperm.xlu1 %875, %v825_v28  }
  0x22   :  { %382 = vperm.xlu0 %874, %v826_v29   ;;  %387 = vperm.xlu1 %875, %v827_v30  }
  0x26   :  { %483 = vperm.xlu0 %874, %v836_v31   ;;  %488 = vperm.xlu1 %875, %v837_v32  }
  0x2a   :  { %493 = vperm.xlu0 %874, %v838_v33   ;;  %498 = vperm.xlu1 %875, %v839_v34  }
  0x2e   :  { %594 = vperm.xlu0 %874, %v848_v35   ;;  %599 = vperm.xlu1 %875, %v849_v37  }
  0x32   :  { %604 = vperm.xlu0 %874, %v850_v40   ;;  %609 = vperm.xlu1 %875, %v851_v41  }
  0x36   :  { %877 = vperm.xlu0 %874, %v876_v43   ;;  %712 = vperm.xlu1 %875, %v867_v44  }
  0x3a   :  { %717 = vperm.xlu0 %874, %v868_v45   ;;  %748 = vperm.xlu1 %875, %v860_v46  }
  0x84   :  { %v39_v47 = vpop.permute.xlu0 %38 }
  0x85   :  { %v49_v56 = vpop.permute.xlu1 %48 }
  0x88   :  { %v44_v51 = vpop.permute.xlu0 %43 }
  0x89   :  { %v54_v3 = vpop.permute.xlu1 %53 }
  0x8c   :  { %v151_v18 = vpop.permute.xlu0 %150 }
  0x8d   :  { %v156_v22 = vpop.permute.xlu1 %155 }
  0x90   :  { %v161_v33 = vpop.permute.xlu0 %160 }
  0x91   :  { %v166_v38 = vpop.permute.xlu1 %165 }
  0xdf   :  { %v107_v48 = vpop.f32.mrb[0].mxu0 }
  0xe0   :  { %v108_v49 = vadd.f32 %v107_v48, %v39_v47  ;;  %v109_v50 = vpop.f32.mrb[1].mxu0 }
  0xe1   :  { %v110_v52 = vadd.f32 %v109_v50, %v39_v47  ;;  %v111_v53 = vpop.f32.mrb[2].mxu0  ;;  %v885_v50 = vld [vmem:[%s1124_s1 + $0x20] sm:$0xff]  }
  0xe2   :  { %v112_v54 = vadd.f32 %v111_v53, %v44_v51  ;;  %v113_v55 = vpop.f32.mrb[3].mxu0  ;;  %v126_v58 = vmax.f32 %v108_v49, 0.0 }
  0xe3   :  { %v114_v57 = vadd.f32 %v113_v55, %v44_v51  ;;  %v127_v60 = vmax.f32 %v110_v52, 0.0  ;;  %v886_v51 = vld [vmem:[%s1124_s1 + $0x28] sm:$0xff]   ;;  %v262_v52 = vpop.permute.xlu0 %261 }
  0xe4   :  { %v128_v59 = vmax.f32 %v112_v54, 0.0 }
  0xe5   :  { %v129_v61 = vmax.f32 %v114_v57, 0.0 }
  0xe6   :  { %v144_v62 = vpack.c.bf16 %v128_v59, %v126_v58 }
  0xe7   :  { %v117_v63 = vpop.f32.mrb[4].mxu0  ;;  %v145_v0 = vpack.c.bf16 %v129_v61, %v127_v60 }
  0xe8   :  { %v118_v1 = vadd.f32 %v117_v63, %v49_v56  ;;  %v119_v2 = vpop.f32.mrb[5].mxu0 }
  0xe9   :  { %v120_v4 = vadd.f32 %v119_v2, %v49_v56  ;;  %v121_v5 = vpop.f32.mrb[6].mxu0  ;;  %184 = vmatprep.subr.bf16.mxu1 %v145_v0  ;;  %v267_v56 = vpop.permute.xlu1 %266 }
  0xea   :  { %v122_v6 = vadd.f32 %v121_v5, %v54_v3  ;;  %v123_v8 = vpop.f32.mrb[7].mxu0  ;;  %185 = vmatpush1.bf16.msra.mxu1 %v144_v62  ;;  %v130_v10 = vmax.f32 %v118_v1, 0.0 }
  0xeb   :  { %v124_v9 = vadd.f32 %v123_v8, %v54_v3  ;;  %v131_v12 = vmax.f32 %v120_v4, 0.0  ;;  %v272_v3 = vpop.permute.xlu0 %271 }
  0xec   :  { %v132_v11 = vmax.f32 %v122_v6, 0.0 }
  0xed   :  { %v133_v13 = vmax.f32 %v124_v9, 0.0  ;;  %v277_v9 = vpop.permute.xlu1 %276 }
  0xee   :  { %v146_v14 = vpack.c.bf16 %v132_v11, %v130_v10 }
  0xef   :  { %v147_v15 = vpack.c.bf16 %v133_v13, %v131_v12 }
  0xf1   :  { %186 = vmatprep.subr.bf16.mxu1 %v147_v15 }
  0xf2   :  { %187 = vmatpush1.bf16.msra.mxu1 %v146_v14 }
  0xf5   :  { %806 = vmatmul.mubr.msk.bf16.vlgmr.msra.gmra.mrb[0].mxu1 %vm66_vm0, %v883_v16 }
  0xf6   :  { %226 = vmatprep.mubr.bf16.mxu1 %v921_v7 }
  0xfd   :  { %807 = vmatmul.mubr.msk.bf16.gmra.mrb[4].mxu1 %vm66_vm0, %v884_v17 }
  0xfe   :  { %438 = vmatprep.mubr.bf16.mxu1 %v921_v7 }
 0x1c8   :  { %v218_v19 = vpop.f32.mrb[0].mxu1 }
 0x1c9   :  { %v219_v20 = vadd.f32 %v218_v19, %v151_v18  ;;  %v220_v21 = vpop.f32.mrb[1].mxu1 }
 0x1ca   :  { %v221_v23 = vadd.f32 %v220_v21, %v151_v18  ;;  %v222_v24 = vpop.f32.mrb[2].mxu1  ;;  %v887_v21 = vld [vmem:[%s1124_s1 + $0x30] sm:$0xff]  }
 0x1cb   :  { %v223_v25 = vadd.f32 %v222_v24, %v156_v22  ;;  %v224_v26 = vpop.f32.mrb[3].mxu1  ;;  %v237_v28 = vmax.f32 %v219_v20, 0.0 }
 0x1cc   :  { %v225_v27 = vadd.f32 %v224_v26, %v156_v22  ;;  %v238_v30 = vmax.f32 %v221_v23, 0.0  ;;  %v888_v22 = vld [vmem:[%s1124_s1 + $0x38] sm:$0xff]   ;;  %v373_v23 = vpop.permute.xlu0 %372 }
 0x1cd   :  { %v239_v29 = vmax.f32 %v223_v25, 0.0 }
 0x1ce   :  { %v240_v31 = vmax.f32 %v225_v27, 0.0  ;;  %v378_v27 = vpop.permute.xlu1 %377 }
 0x1cf   :  { %v255_v32 = vpack.c.bf16 %v239_v29, %v237_v28 }
 0x1d0   :  { %v256_v34 = vpack.c.bf16 %v240_v31, %v238_v30  ;;  %v228_v35 = vpop.f32.mrb[4].mxu1 }
 0x1d1   :  { %v229_v36 = vadd.f32 %v228_v35, %v161_v33  ;;  %v230_v37 = vpop.f32.mrb[5].mxu1 }
 0x1d2   :  { %v231_v39 = vadd.f32 %v230_v37, %v161_v33  ;;  %v232_v40 = vpop.f32.mrb[6].mxu1  ;;  %295 = vmatprep.subr.bf16.mxu0 %v256_v34 }
 0x1d3   :  { %v233_v41 = vadd.f32 %v232_v40, %v166_v38  ;;  %v234_v42 = vpop.f32.mrb[7].mxu1  ;;  %296 = vmatpush1.bf16.msra.mxu0 %v255_v32  ;;  %v241_v44 = vmax.f32 %v229_v36, 0.0 }
 0x1d4   :  { %v235_v43 = vadd.f32 %v234_v42, %v166_v38  ;;  %v242_v46 = vmax.f32 %v231_v39, 0.0  ;;  %v383_v38 = vpop.permute.xlu0 %382 }
 0x1d5   :  { %v243_v45 = vmax.f32 %v233_v41, 0.0 }
 0x1d6   :  { %v244_v47 = vmax.f32 %v235_v43, 0.0  ;;  %v388_v43 = vpop.permute.xlu1 %387 }
 0x1d7   :  { %v257_v48 = vpack.c.bf16 %v243_v45, %v241_v44 }
 0x1d8   :  { %v258_v49 = vpack.c.bf16 %v244_v47, %v242_v46 }
 0x1da   :  { %297 = vmatprep.subr.bf16.mxu0 %v258_v49 }
 0x1db   :  { %298 = vmatpush1.bf16.msra.mxu0 %v257_v48 }
 0x1de   :  { %818 = vmatmul.mubr.msk.bf16.vlgmr.msra.gmra.mrb[8].mxu0 %vm66_vm0, %v885_v50 }
 0x1df   :  { %337 = vmatprep.mubr.bf16.mxu0 %v921_v7 }
 0x1e6   :  { %819 = vmatmul.mubr.msk.bf16.gmra.mrb[12].mxu0 %vm66_vm0, %v886_v51 }
 0x1e7   :  { %549 = vmatprep.mubr.bf16.mxu0 %v921_v7 }
 0x2b1   :  { %v329_v53 = vpop.f32.mrb[8].mxu0 }
 0x2b2   :  { %v330_v54 = vadd.f32 %v329_v53, %v262_v52  ;;  %v331_v55 = vpop.f32.mrb[9].mxu0 }
 0x2b3   :  { %v332_v57 = vadd.f32 %v331_v55, %v262_v52  ;;  %v333_v58 = vpop.f32.mrb[10].mxu0  ;;  %v889_v55 = vld [vmem:[%s1124_s1 + $0x40] sm:$0xff]  }
 0x2b4   :  { %v334_v59 = vadd.f32 %v333_v58, %v267_v56  ;;  %v335_v60 = vpop.f32.mrb[11].mxu0  ;;  %v348_v62 = vmax.f32 %v330_v54, 0.0 }
 0x2b5   :  { %v336_v61 = vadd.f32 %v335_v60, %v267_v56  ;;  %v349_v0 = vmax.f32 %v332_v57, 0.0  ;;  %v890_v56 = vld [vmem:[%s1124_s1 + $0x48] sm:$0xff]   ;;  %v484_v57 = vpop.permute.xlu0 %483 }
 0x2b6   :  { %v350_v63 = vmax.f32 %v334_v59, 0.0 }
 0x2b7   :  { %v351_v1 = vmax.f32 %v336_v61, 0.0  ;;  %v489_v61 = vpop.permute.xlu1 %488 }
 0x2b8   :  { %v366_v2 = vpack.c.bf16 %v350_v63, %v348_v62 }
 0x2b9   :  { %v367_v4 = vpack.c.bf16 %v351_v1, %v349_v0  ;;  %v339_v5 = vpop.f32.mrb[12].mxu0 }
 0x2ba   :  { %v340_v6 = vadd.f32 %v339_v5, %v272_v3  ;;  %v341_v8 = vpop.f32.mrb[13].mxu0 }
 0x2bb   :  { %v342_v10 = vadd.f32 %v341_v8, %v272_v3  ;;  %v343_v11 = vpop.f32.mrb[14].mxu0  ;;  %406 = vmatprep.subr.bf16.mxu1 %v367_v4 }
 0x2bc   :  { %v344_v12 = vadd.f32 %v343_v11, %v277_v9  ;;  %v345_v13 = vpop.f32.mrb[15].mxu0  ;;  %407 = vmatpush1.bf16.msra.mxu1 %v366_v2  ;;  %v352_v15 = vmax.f32 %v340_v6, 0.0 }
 0x2bd   :  { %v346_v14 = vadd.f32 %v345_v13, %v277_v9  ;;  %v353_v17 = vmax.f32 %v342_v10, 0.0  ;;  %v494_v9 = vpop.permute.xlu0 %493 }
 0x2be   :  { %v354_v16 = vmax.f32 %v344_v12, 0.0 }
 0x2bf   :  { %v355_v18 = vmax.f32 %v346_v14, 0.0  ;;  %v499_v14 = vpop.permute.xlu1 %498 }
 0x2c0   :  { %v368_v19 = vpack.c.bf16 %v354_v16, %v352_v15 }
 0x2c1   :  { %v369_v20 = vpack.c.bf16 %v355_v18, %v353_v17 }
 0x2c3   :  { %408 = vmatprep.subr.bf16.mxu1 %v369_v20 }
 0x2c4   :  { %409 = vmatpush1.bf16.msra.mxu1 %v368_v19 }
 0x2c7   :  { %830 = vmatmul.mubr.msk.bf16.vlgmr.msra.gmra.mrb[8].mxu1 %vm66_vm0, %v887_v21 }
 0x2c8   :  { %448 = vmatprep.mubr.bf16.mxu1 %v921_v7 }
 0x2cf   :  { %831 = vmatmul.mubr.msk.bf16.gmra.mrb[12].mxu1 %vm66_vm0, %v888_v22 }
 0x2d0   :  { %660 = vmatprep.mubr.bf16.mxu1 %v921_v7 }
 0x39a   :  { %v440_v24 = vpop.f32.mrb[8].mxu1 }
 0x39b   :  { %v441_v25 = vadd.f32 %v440_v24, %v373_v23  ;;  %v442_v26 = vpop.f32.mrb[9].mxu1 }
 0x39c   :  { %v443_v28 = vadd.f32 %v442_v26, %v373_v23  ;;  %v444_v29 = vpop.f32.mrb[10].mxu1  ;;  %v891_v26 = vld [vmem:[%s1124_s1 + $0x50] sm:$0xff]  }
 0x39d   :  { %v445_v30 = vadd.f32 %v444_v29, %v378_v27  ;;  %v446_v31 = vpop.f32.mrb[11].mxu1  ;;  %v459_v33 = vmax.f32 %v441_v25, 0.0 }
 0x39e   :  { %v447_v32 = vadd.f32 %v446_v31, %v378_v27  ;;  %v460_v35 = vmax.f32 %v443_v28, 0.0  ;;  %v892_v27 = vld [vmem:[%s1124_s1 + $0x58] sm:$0xff]   ;;  %v595_v28 = vpop.permute.xlu0 %594  ;;  %s923_s1 = smov [#allocation2]  }
 0x39f   :  { %v461_v34 = vmax.f32 %v445_v30, 0.0  ;;  %v600_v30 = vpop.permute.xlu1 %599  ;;  %s784_s21 = sshll.u32 %s923_s1, 4  ;;  %s785_s21 = int_to_ptr.vmem [resolvable:$true] %s784_s21 }
 0x3a0   :  { %v462_v36 = vmax.f32 %v447_v32, 0.0  ;;  %s897_s22 = scalar_lea.vmem %s785_s21, 32  ;;  %p902_p1 = scmp.lt.s32.totalorder %s785_s21, %s785_s21 }
 0x3a1   :  { %v477_v37 = vpack.c.bf16 %v461_v34, %v459_v33  ;;  %p898_p0 = scmp.ne.s32.totalorder %s785_s21, %s897_s22  ;;  %p903_p2 = scmp.lt.s32.totalorder %s897_s22, %s897_s22 }
 0x3a2   :  { %v478_v39 = vpack.c.bf16 %v462_v36, %v460_v35  ;;  %v450_v40 = vpop.f32.mrb[12].mxu1  ;;  %v605_v29 = vpop.permute.xlu0 %604 }
 0x3a3   :  { %v451_v41 = vadd.f32 %v450_v40, %v383_v38  ;;  %v452_v42 = vpop.f32.mrb[13].mxu1  ;;  %p904_p3 = por %p903_p2, %p902_p1 }
 0x3a4   :  { %v453_v44 = vadd.f32 %v452_v42, %v383_v38  ;;  %v454_v45 = vpop.f32.mrb[14].mxu1  ;;  %517 = vmatprep.subr.bf16.mxu0 %v478_v39 }
 0x3a5   :  { %v455_v46 = vadd.f32 %v454_v45, %v388_v43  ;;  %v456_v47 = vpop.f32.mrb[15].mxu1  ;;  %518 = vmatpush1.bf16.msra.mxu0 %v477_v37  ;;  %v463_v49 = vmax.f32 %v451_v41, 0.0  ;;  %p905_p4 = pnand %p904_p3, %p898_p0 }
 0x3a6   :  { %v457_v48 = vadd.f32 %v456_v47, %v388_v43  ;;  %v464_v51 = vmax.f32 %v453_v44, 0.0  ;;  %v878_v39 = vpop.permute.xlu0 %877  ;;  %v610_v44 = vpop.permute.xlu1 %609 }
 0x3a7   :  { %v465_v50 = vmax.f32 %v455_v46, 0.0  ;;  %v880_v41 = vunpack.i.h.bf16 %v878_v39  ;;  %v879_v42 = vunpack.i.l.bf16 %v878_v39 }
 0x3a8   :  { %v466_v52 = vmax.f32 %v457_v48, 0.0 }
 0x3a9   :  { %v479_v53 = vpack.c.bf16 %v465_v50, %v463_v49 }
 0x3aa   :  { %v480_v54 = vpack.c.bf16 %v466_v52, %v464_v51 }
 0x3ac   :  { %519 = vmatprep.subr.bf16.mxu0 %v480_v54 }
 0x3ad   :  { %520 = vmatpush1.bf16.msra.mxu0 %v479_v53 }
 0x3b0   :  { %842 = vmatmul.mubr.msk.bf16.vlgmr.msra.gmra.mrb[16].mxu0 %vm66_vm0, %v889_v55 }
 0x3b1   :  { %559 = vmatprep.mubr.bf16.mxu0 %v921_v7 }
 0x3b8   :  { %843 = vmatmul.mubr.msk.bf16.gmra.mrb[20].mxu0 %vm66_vm0, %v890_v56 }
 0x483   :  { %v551_v58 = vpop.f32.mrb[16].mxu0 }
 0x484   :  { %v552_v59 = vadd.f32 %v551_v58, %v484_v57  ;;  %v553_v60 = vpop.f32.mrb[17].mxu0 }
 0x485   :  { %v554_v62 = vadd.f32 %v553_v60, %v484_v57  ;;  %v555_v63 = vpop.f32.mrb[18].mxu0  ;;  %v713_v60 = vpop.permute.xlu1 %712 }
 0x486   :  { %v556_v0 = vadd.f32 %v555_v63, %v489_v61  ;;  %v557_v1 = vpop.f32.mrb[19].mxu0  ;;  %v570_v3 = vmax.f32 %v552_v59, 0.0 }
 0x487   :  { %v558_v2 = vadd.f32 %v557_v1, %v489_v61  ;;  %v571_v5 = vmax.f32 %v554_v62, 0.0  ;;  %v718_v1 = vpop.permute.xlu0 %717 }
 0x488   :  { %v572_v4 = vmax.f32 %v556_v0, 0.0 }
 0x489   :  { %v573_v6 = vmax.f32 %v558_v2, 0.0 }
 0x48a   :  { %v588_v8 = vpack.c.bf16 %v572_v4, %v570_v3 }
 0x48b   :  { %v589_v10 = vpack.c.bf16 %v573_v6, %v571_v5  ;;  %v561_v11 = vpop.f32.mrb[20].mxu0 }
 0x48c   :  { %v562_v12 = vadd.f32 %v561_v11, %v494_v9  ;;  %v563_v13 = vpop.f32.mrb[21].mxu0 }
 0x48d   :  { %v564_v15 = vadd.f32 %v563_v13, %v494_v9  ;;  %v565_v16 = vpop.f32.mrb[22].mxu0  ;;  %628 = vmatprep.subr.bf16.mxu1 %v589_v10 }
 0x48e   :  { %v566_v17 = vadd.f32 %v565_v16, %v499_v14  ;;  %v567_v18 = vpop.f32.mrb[23].mxu0  ;;  %629 = vmatpush1.bf16.msra.mxu1 %v588_v8  ;;  %v574_v20 = vmax.f32 %v562_v12, 0.0 }
 0x48f   :  { %v568_v19 = vadd.f32 %v567_v18, %v499_v14  ;;  %v575_v22 = vmax.f32 %v564_v15, 0.0 }
 0x490   :  { %v576_v21 = vmax.f32 %v566_v17, 0.0 }
 0x491   :  { %v577_v23 = vmax.f32 %v568_v19, 0.0 }
 0x492   :  { %v590_v24 = vpack.c.bf16 %v576_v21, %v574_v20 }
 0x493   :  { %v591_v25 = vpack.c.bf16 %v577_v23, %v575_v22  ;;  %v749_v22 = vpop.permute.xlu1 %748 }
 0x495   :  { %630 = vmatprep.subr.bf16.mxu1 %v591_v25 }
 0x496   :  { %631 = vmatpush1.bf16.msra.mxu1 %v590_v24 }
 0x499   :  { %854 = vmatmul.mubr.msk.bf16.vlgmr.msra.gmra.mrb[16].mxu1 %vm66_vm0, %v891_v26  ;;  %v922_v26 = vmov 1966171168  }
 0x49a   :  { %670 = vmatprep.mubr.bf16.mxu1 %v921_v7 }
 0x4a1   :  { %855 = vmatmul.mubr.msk.bf16.gmra.mrb[20].mxu1 %vm66_vm0, %v892_v27  ;;  %v759_v27 = vunpack.c.l.s4 %v922_v26 }
 0x56c   :  { %v662_v31 = vpop.f32.mrb[16].mxu1 }
 0x56d   :  { %v663_v32 = vadd.f32 %v662_v31, %v595_v28  ;;  %v664_v33 = vpop.f32.mrb[17].mxu1 }
 0x56e   :  { %v665_v34 = vadd.f32 %v664_v33, %v595_v28  ;;  %v666_v35 = vpop.f32.mrb[18].mxu1  ;;  %v761_v28 = vlaneseq }
 0x56f   :  { %v681_v36 = vmax.f32 %v663_v32, 0.0  ;;  %v667_v37 = vadd.f32 %v666_v35, %v600_v30  ;;  %v668_v38 = vpop.f32.mrb[19].mxu1 }
 0x570   :  { %v682_v40 = vmax.f32 %v665_v34, 0.0  ;;  %v669_v7 = vadd.f32 %v668_v38, %v600_v30  ;;  %v762_v30 = vshrl.u32 %v761_v28, 7  ;;  %vm775_vm1 = vcmp.lt.s32.totalorder %v761_v28, 256 }
 0x571   :  { %v683_v43 = vmax.f32 %v667_v37, 0.0  ;;  %v720_v46 = vmul.f32 %v879_v42, %v681_v36 }
 0x572   :  { %v684_v45 = vmax.f32 %v669_v7, 0.0  ;;  %v721_v48 = vmul.f32 %v879_v42, %v682_v40 }
 0x573   :  { %v722_v47 = vmul.f32 %v880_v41, %v683_v43 }
 0x574   :  { %v723_v49 = vmul.f32 %v880_v41, %v684_v45  ;;  %v672_v50 = vpop.f32.mrb[20].mxu1 }
 0x575   :  { %v728_v51 = vadd.f32 %v722_v47, %v720_v46  ;;  %v673_v52 = vadd.f32 %v672_v50, %v605_v29  ;;  %v674_v53 = vpop.f32.mrb[21].mxu1 }
 0x576   :  { %v737_v54 = vadd.f32 %v723_v49, %v721_v48  ;;  %v675_v55 = vadd.f32 %v674_v53, %v605_v29  ;;  %v676_v56 = vpop.f32.mrb[22].mxu1  ;;  %v760_v29 = vunpack.c.0.s8 %v759_v27 }
 0x577   :  { %v685_v57 = vmax.f32 %v673_v52, 0.0  ;;  %v677_v58 = vadd.f32 %v676_v56, %v610_v44  ;;  %v678_v59 = vpop.f32.mrb[23].mxu1 }
 0x578   :  { %v686_v61 = vmax.f32 %v675_v55, 0.0  ;;  %v679_v62 = vadd.f32 %v678_v59, %v610_v44  ;;  %v763_v32 = vsub.s32 %v760_v29, %v762_v30 }
 0x579   :  { %v724_v63 = vmul.f32 %v713_v60, %v685_v57  ;;  %v687_v0 = vmax.f32 %v677_v58, 0.0 }
 0x57a   :  { %v725_v2 = vmul.f32 %v713_v60, %v686_v61  ;;  %v688_v3 = vmax.f32 %v679_v62, 0.0 }
 0x57b   :  { %v729_v4 = vadd.f32 %v728_v51, %v724_v63  ;;  %v726_v5 = vmul.f32 %v718_v1, %v687_v0 }
 0x57c   :  { %v738_v6 = vadd.f32 %v737_v54, %v725_v2  ;;  %v727_v8 = vmul.f32 %v718_v1, %v688_v3 }
 0x57d   :  { %v730_v9 = vadd.f32 %v729_v4, %v726_v5 }
 0x57e   :  { %v739_v10 = vadd.f32 %v738_v6, %v727_v8 }
 0x57f   :  { %v731_v11 = vrot.slane %v730_v9, 4 }
 0x580   :  { %v740_v12 = vrot.slane %v739_v10, 4 }
 0x581   :  { %v732_v13 = vadd.f32 %v731_v11, %v730_v9 }
 0x582   :  { %v741_v14 = vadd.f32 %v740_v12, %v739_v10 }
 0x583   :  { %v733_v15 = vrot.slane %v732_v13, 2 }
 0x584   :  { %v742_v16 = vrot.slane %v741_v14, 2 }
 0x585   :  { %v734_v17 = vadd.f32 %v733_v15, %v732_v13 }
 0x586   :  { %v743_v18 = vadd.f32 %v742_v16, %v741_v14 }
 0x587   :  { %v735_v19 = vrot.slane %v734_v17, 1 }
 0x588   :  { %v744_v20 = vrot.slane %v743_v18, 1 }
 0x589   :  { %v736_v21 = vadd.f32 %v735_v19, %v734_v17 }
 0x58a   :  { %v745_v23 = vadd.f32 %v744_v20, %v743_v18 }
 0x58b   :  { %v751_v24 = vadd.f32 %v749_v22, %v736_v21 }
 0x58c   :  { %v752_v25 = vadd.f32 %v749_v22, %v745_v23 }
 0x58d   :  { %893 = vtanh.f32 %v751_v24 }
 0x58e   :  { %895 = vtanh.f32 %v752_v25 }
 0x597   :  { %v894_v31 = vpop.eup %893 }
 0x598   :  { %v896_v33 = vpop.eup %895 }
 0x599   :  { %v757_v34 = vcombine.low %v894_v31, %v896_v33 }
 0x59b   :  { %v764_v35 = vrot.slane %v757_v34, %v763_v32 }
 0x59d   :  { %v771_v36 = vrot.slane %v764_v35, %v763_v32 }
 0x59f   :  { %777 = vst.msk [vmem:[#allocation2] sm:$0x3] %vm775_vm1, %v771_v36 }
 0x5a0   :  { %908 = shalt.err (!%p905_p4)
}
 0x5a1   :  { %s909_s25 = scalar_lea.hbm %s1126_s3, 32 }
 0x5a2   :  { %p910_p5 = scmp.ne.s32.totalorder %s1126_s3, %s909_s25  ;;  %p913_p6 = scmp.lt.u32.totalorder %s909_s25, %s1126_s3 }
 0x5a4   :  { %p915_p7 = pnand %p913_p6, %p910_p5 }
 0x5a6   :  { %918 = shalt.err (!%p915_p7)
}
 0x5a7   :  { %787 = dma.vmem_to_hbm [thread:$0]  %s785_s21, 32, %s1126_s3, [#allocation3]  }
 0x5a8   :  { %919 = dma.done.wait [#allocation3], 32  }
 0x5a9   :  { %920 = vsyncadd [#allocation3], 4294967264 }
 0x5aa   :  { %791 = vsyncpa [#allocation3], 1 }

</bundles_post_ra>
